<compile_context>
chip_gen: v5e
topology: v5e:2x2
jax: 0.10.0
libtpu: 0.0.40
codegen_flags: <defaults>
</compile_context>

<pallas_src>
import jax
import jax.numpy as jnp
from jax.experimental import pallas as pl
from jax.experimental.pallas import tpu as pltpu


K_IN = 784        # 28*28
K_PAD = 896       # 7 * 128 (lane-aligned contraction dim)
N_HID = 128
N_OUT = 10
N_PAD = 128       # lane-dense output width


def _round_up(n, m):
    return ((n + m - 1) // m) * m


def mlp_kernel(x_ref, w1_ref, b1_ref, w2_ref, b2_ref, o_ref):
    # fc1: (TB, 896)bf16 @ (896, 128)bf16 -> (TB, 128) f32 accumulation on MXU
    h = jnp.dot(x_ref[...], w1_ref[...], preferred_element_type=jnp.float32)
    h = h + b1_ref[...]                       # f32 bias, broadcast over batch
    # sigmoid on the VPU/EUP, stays in vregs
    z = jax.nn.sigmoid(h)
    # fc2: (TB, 128)bf16 @ (128, 128)bf16 -> (TB, 128) f32 accumulation
    y = jnp.dot(z.astype(w2_ref.dtype), w2_ref[...],
                preferred_element_type=jnp.float32)
    y = y + b2_ref[...]                       # f32 bias (zero-padded past 10)
    o_ref[...] = y.astype(o_ref.dtype)        # lane-dense (TB, 128) store


def simple_mlp_forward(x_nchw, w1, b1, w2, b2, *, tb=1024):
    """x_nchw: (B, C, H, W) with C*H*W == 784. Returns (B, 10) float32.

    w1: (784, 128), b1: (1, 128), w2: (128, 10), b2: (1, 10) — i.e. the
    transpose of PyTorch nn.Linear weights.
    """
    B = x_nchw.shape[0]
    x_flat = x_nchw.reshape(B, -1)
    assert x_flat.shape[1] == K_IN

    # --- batch tile selection (multiple of 8 sublanes, pad B up to tiles) ---
    b8 = _round_up(max(B, 1), 8)
    tb = _round_up(min(tb, b8), 8)
    b_pad = _round_up(b8, tb)
    nb = b_pad // tb

    # --- pad + cast once in the wrapper (pad regions are exactly zero) ---
    x_p = jnp.zeros((b_pad, K_PAD), jnp.bfloat16)
    x_p = x_p.at[:B, :K_IN].set(x_flat.astype(jnp.bfloat16))

    w1_p = jnp.zeros((K_PAD, N_HID), jnp.bfloat16)
    w1_p = w1_p.at[:K_IN, :].set(w1.astype(jnp.bfloat16))
    b1_p = b1.reshape(1, N_HID).astype(jnp.float32)

    w2_p = jnp.zeros((N_HID, N_PAD), jnp.bfloat16)
    w2_p = w2_p.at[:, :N_OUT].set(w2.astype(jnp.bfloat16))
    b2_p = jnp.zeros((1, N_PAD), jnp.float32)
    b2_p = b2_p.at[:, :N_OUT].set(b2.reshape(1, N_OUT).astype(jnp.float32))

    out = pl.pallas_call(
        mlp_kernel,
        out_shape=jax.ShapeDtypeStruct((b_pad, N_PAD), jnp.float32),
        grid_spec=pltpu.PrefetchScalarGridSpec(
            num_scalar_prefetch=0,
            grid=(nb,),
            in_specs=[
                # x: tiled over batch, double-buffered by the pipeline
                pl.BlockSpec((tb, K_PAD), lambda i: (i, 0)),
                # weights / biases: same block every step -> resident in VMEM
                pl.BlockSpec((K_PAD, N_HID), lambda i: (0, 0)),
                pl.BlockSpec((1, N_HID), lambda i: (0, 0)),
                pl.BlockSpec((N_HID, N_PAD), lambda i: (0, 0)),
                pl.BlockSpec((1, N_PAD), lambda i: (0, 0)),
            ],
            out_specs=pl.BlockSpec((tb, N_PAD), lambda i: (i, 0)),
        ),
        compiler_params=pltpu.CompilerParams(
            dimension_semantics=("parallel",),
        ),
    )(x_p, w1_p, b1_p, w2_p, b2_p)

    # strip batch padding and the zero-padded output lanes
    return out[:B, :N_OUT]


def init_params(key):
    """Deterministic init matching nn.Linear shapes (stored transposed)."""
    k1, k2, k3, k4 = jax.random.split(key, 4)
    # PyTorch nn.Linear default init: U(-1/sqrt(fan_in), 1/sqrt(fan_in))
    bound1 = 1.0 / jnp.sqrt(784.0)
    bound2 = 1.0 / jnp.sqrt(128.0)
    w1 = jax.random.uniform(k1, (784, 128), jnp.float32, -bound1, bound1)
    b1 = jax.random.uniform(k2, (1, 128), jnp.float32, -bound1, bound1)
    w2 = jax.random.uniform(k3, (128, 10), jnp.float32, -bound2, bound2)
    b2 = jax.random.uniform(k4, (1, 10), jnp.float32, -bound2, bound2)
    return w1, b1, w2, b2


if __name__ == "__main__":
    key = jax.random.PRNGKey(0)
    k_x, k_p = jax.random.split(key)

    # Small example input consistent with the module: B=2, NCHW (2, 1, 28, 28)
    x = jax.random.normal(k_x, (2, 1, 28, 28), dtype=jnp.float32)
    w1, b1, w2, b2 = init_params(k_p)

    y = simple_mlp_forward(x, w1, b1, w2, b2)
    jax.block_until_ready(y)
    assert y.shape == (2, 10)

    # Reference 1: pure f32 math (semantic check, loose tol because the
    # kernel feeds bf16 inputs to the MXU).
    x_flat = x.reshape(x.shape[0], -1)
    h_ref = x_flat @ w1 + b1
    z_ref = jax.nn.sigmoid(h_ref)
    y_ref_f32 = z_ref @ w2 + b2
    assert jnp.allclose(y, y_ref_f32, atol=2e-2, rtol=2e-2)

    # Reference 2: f32 math on the same bf16-quantized inputs (kernel check).
    xb = x_flat.astype(jnp.bfloat16).astype(jnp.float32)
    w1b = w1.astype(jnp.bfloat16).astype(jnp.float32)
    w2b = w2.astype(jnp.bfloat16).astype(jnp.float32)
    hq = xb @ w1b + b1
    zq = jax.nn.sigmoid(hq)
    zqb = zq.astype(jnp.bfloat16).astype(jnp.float32)
    y_ref_q = zqb @ w2b + b2
    assert jnp.allclose(y, y_ref_q, atol=2e-3, rtol=2e-3)

    print("KERNEL_OK")
</pallas_src>

<mosaic_0001>
module attributes {stable_mosaic.version = 11 : i64} {
  func.func @mlp_kernel(%arg0: i32, %arg1: memref<8x896xbf16, #tpu.memory_space<vmem>>, %arg2: memref<896x128xbf16, #tpu.memory_space<vmem>>, %arg3: memref<1x128xf32, #tpu.memory_space<vmem>>, %arg4: memref<128x128xbf16, #tpu.memory_space<vmem>>, %arg5: memref<1x128xf32, #tpu.memory_space<vmem>>, %arg6: memref<8x128xf32, #tpu.memory_space<vmem>>) attributes {dimension_semantics = [#tpu.dimension_semantics<parallel>], iteration_bounds = array<i64: 1>, scalar_prefetch = 0 : i64, scratch_operands = 0 : i64, tpu.core_type = #tpu.core_type<tc>, window_params = [{transform_indices = @transform_0, window_bounds = array<i64: 8, 896>}, {pipeline_mode = #tpu.pipeline_mode<synchronous>, transform_indices = @transform_1, window_bounds = array<i64: 896, 128>}, {pipeline_mode = #tpu.pipeline_mode<synchronous>, transform_indices = @transform_2, window_bounds = array<i64: 1, 128>}, {pipeline_mode = #tpu.pipeline_mode<synchronous>, transform_indices = @transform_3, window_bounds = array<i64: 128, 128>}, {pipeline_mode = #tpu.pipeline_mode<synchronous>, transform_indices = @transform_4, window_bounds = array<i64: 1, 128>}, {transform_indices = @transform_5, window_bounds = array<i64: 8, 128>}]} {
    %c0 = arith.constant 0 : index
    %c0_0 = arith.constant 0 : index
    %0 = vector.load %arg1[%c0, %c0_0] : memref<8x896xbf16, #tpu.memory_space<vmem>>, vector<8x896xbf16>
    %c0_1 = arith.constant 0 : index
    %c0_2 = arith.constant 0 : index
    %1 = vector.load %arg2[%c0_1, %c0_2] : memref<896x128xbf16, #tpu.memory_space<vmem>>, vector<896x128xbf16>
    %cst = arith.constant dense<0.000000e+00> : vector<8x128xf32>
    %2 = tpu.matmul %0, %1, %cst {dimension_numbers = #tpu.dot_dimension_numbers<[1], [0], [0], [1], [0, 0, 1, 1], [], []>} : vector<8x896xbf16>, vector<896x128xbf16>, vector<8x128xf32> -> vector<8x128xf32>
    %c0_3 = arith.constant 0 : index
    %c0_4 = arith.constant 0 : index
    %3 = vector.load %arg3[%c0_3, %c0_4] : memref<1x128xf32, #tpu.memory_space<vmem>>, vector<1x128xf32>
    %4 = vector.broadcast %3 : vector<1x128xf32> to vector<8x128xf32>
    %5 = arith.addf %2, %4 : vector<8x128xf32>
    %6 = arith.negf %5 : vector<8x128xf32>
    %7 = math.exp %6 : vector<8x128xf32>
    %cst_5 = arith.constant 1.000000e+00 : f32
    %8 = vector.broadcast %cst_5 : f32 to vector<8x128xf32>
    %9 = arith.addf %8, %7 : vector<8x128xf32>
    %10 = arith.divf %8, %9 : vector<8x128xf32>
    %11 = arith.truncf %10 : vector<8x128xf32> to vector<8x128xbf16>
    %c0_6 = arith.constant 0 : index
    %c0_7 = arith.constant 0 : index
    %12 = vector.load %arg4[%c0_6, %c0_7] : memref<128x128xbf16, #tpu.memory_space<vmem>>, vector<128x128xbf16>
    %cst_8 = arith.constant dense<0.000000e+00> : vector<8x128xf32>
    %13 = tpu.matmul %11, %12, %cst_8 {dimension_numbers = #tpu.dot_dimension_numbers<[1], [0], [0], [1], [0, 0, 1, 1], [], []>} : vector<8x128xbf16>, vector<128x128xbf16>, vector<8x128xf32> -> vector<8x128xf32>
    %c0_9 = arith.constant 0 : index
    %c0_10 = arith.constant 0 : index
    %14 = vector.load %arg5[%c0_9, %c0_10] : memref<1x128xf32, #tpu.memory_space<vmem>>, vector<1x128xf32>
    %15 = vector.broadcast %14 : vector<1x128xf32> to vector<8x128xf32>
    %16 = arith.addf %13, %15 : vector<8x128xf32>
    %c0_11 = arith.constant 0 : index
    %c0_12 = arith.constant 0 : index
    %17 = vector.load %arg6[%c0_11, %c0_12] : memref<8x128xf32, #tpu.memory_space<vmem>>, vector<8x128xf32>
    tpu.vector_store %arg6[%c0_11, %c0_12], %16 {strides = array<i32>} : memref<8x128xf32, #tpu.memory_space<vmem>>, vector<8x128xf32>,
    return
  }
  func.func @transform_0(%arg0: i32) -> (i32, i32) {
    %c0_i32 = arith.constant 0 : i32
    %c0_i32_0 = arith.constant 0 : i32
    return %arg0, %c0_i32 : i32, i32
  }
  func.func @transform_1(%arg0: i32) -> (i32, i32) {
    %c0_i32 = arith.constant 0 : i32
    %c0_i32_0 = arith.constant 0 : i32
    %c0_i32_1 = arith.constant 0 : i32
    return %c0_i32, %c0_i32_0 : i32, i32
  }
  func.func @transform_2(%arg0: i32) -> (i32, i32) {
    %c0_i32 = arith.constant 0 : i32
    %c0_i32_0 = arith.constant 0 : i32
    %c0_i32_1 = arith.constant 0 : i32
    return %c0_i32, %c0_i32_0 : i32, i32
  }
  func.func @transform_3(%arg0: i32) -> (i32, i32) {
    %c0_i32 = arith.constant 0 : i32
    %c0_i32_0 = arith.constant 0 : i32
    %c0_i32_1 = arith.constant 0 : i32
    return %c0_i32, %c0_i32_0 : i32, i32
  }
  func.func @transform_4(%arg0: i32) -> (i32, i32) {
    %c0_i32 = arith.constant 0 : i32
    %c0_i32_0 = arith.constant 0 : i32
    %c0_i32_1 = arith.constant 0 : i32
    return %c0_i32, %c0_i32_0 : i32, i32
  }
  func.func @transform_5(%arg0: i32) -> (i32, i32) {
    %c0_i32 = arith.constant 0 : i32
    %c0_i32_0 = arith.constant 0 : i32
    return %arg0, %c0_i32 : i32, i32
  }
}

</mosaic_0001>

<bundles_post_ra>
// kernel: tpu_custom_call.1
= control target key start
LH: loop header
LB: loop body
LE: loop exit
PB: predicated region body
PF: predicated region fallthrough
CT: control target
= control target key end

     0   :  { %10 = vsyncpa [#allocation3], 0  ;;  %s1247_s0 = inlined_call_operand.hbm [shape: bf16[8,896], index: 0, kind: input, shape index: {}]   ;;  %s1248_s1 = inlined_call_operand.hbm [shape: bf16[896,128], index: 1, kind: input, shape index: {}]   ;;  %s1249_s2 = inlined_call_operand.vmem [shape: f32[1,128], index: 2, kind: input, shape index: {}]   ;;  %s1250_s3 = inlined_call_operand.hbm [shape: bf16[128,128], index: 3, kind: input, shape index: {}]   ;;  %s1251_s4 = inlined_call_operand.vmem [shape: f32[1,128], index: 4, kind: input, shape index: {}]   ;;  %s1252_s5 = inlined_call_operand.hbm [shape: f32[8,128], index: 5, kind: output, shape index: {}]  }
   0x1   :  { %11 = vsyncpa [#allocation6], 0  ;;  %s28_s20 = sshll.u32 %s1248_s1, 4  ;;  %s29_s20 = int_to_ptr.hbm [resolvable:$true] %s28_s20 }
   0x2   :  { %12 = vsyncpa [#allocation4], 0  ;;  %s1193_s21 = smov [#allocation5]   ;;  %s18_s25 = sshll.u32 %s1247_s0, 4  ;;  %s19_s25 = int_to_ptr.hbm [resolvable:$true] %s18_s25 }
   0x3   :  { %s30_s22 = sshll.u32 %s1193_s21, 4  ;;  %s1194_s26 = smov 64   ;;  %s31_s22 = int_to_ptr.vmem [resolvable:$true] %s30_s22 }
   0x4   :  { %s1195_s27 = smov 4   ;;  %s1196_s28 = smov [#allocation2]  }
   0x5   :  { %36 = dma.hbm_to_vmem [thread:$0]  %s29_s20, 7168, %s31_s22, [#allocation6], %s1194_s26, %s1194_s26, %s1195_s27  }
   0x6   :  { %s20_s29 = sshll.u32 %s1196_s28, 4  ;;  %s43_s7 = sshll.u32 %s1250_s3, 4  ;;  %s21_s29 = int_to_ptr.vmem [resolvable:$true] %s20_s29  ;;  %s44_s7 = int_to_ptr.hbm [resolvable:$true] %s43_s7 }
   0x7   :  { %23 = dma.hbm_to_vmem [thread:$0]  %s19_s25, 448, %s21_s29, [#allocation3]  }
   0x8   :  { %s1197_s1 = smov [#allocation7]  }
   0x9   :  { %s45_s8 = sshll.u32 %s1197_s1, 4  ;;  %s46_s8 = int_to_ptr.vmem [resolvable:$true] %s45_s8 }
   0xa   :  { %51 = dma.hbm_to_vmem [thread:$0]  %s44_s7, 1024, %s46_s8, [#allocation6], %s1194_s26, %s1194_s26, %s1195_s27  }
   0xb   :  { %1187 = dma.done.wait [#allocation3], 448  }
   0xc   :  { %1188 = vsyncadd [#allocation3], 4294966848 }
   0xd   :  { %1189 = dma.done.wait [#allocation6], 8192  }
   0xe   :  { %1190 = vsyncadd [#allocation6], 4294959104  ;;  %v1022_v0 = vld [vmem:[#allocation5 + $0x38] sm:$0xff]  ;;  %v1021_v3 = vld [vmem:[#allocation5 + $0x30] sm:$0xff]  ;;  %s1198_s10 = smov [#allocation8]   ;;  %s747_s14 = sshll.u32 %s1252_s5, 4  ;;  %s748_s14 = int_to_ptr.hbm [resolvable:$true] %s747_s14 }
   0xf   :  { %v1030_v1 = vld [vmem:[#allocation5 + $0x78] sm:$0xff]  ;;  %547 = vmatpush.bf16.msra.mxu0 %v1022_v0  ;;  %v1029_v4 = vld [vmem:[#allocation5 + $0x70] sm:$0xff]  ;;  %v1020_v7 = vld [vmem:[#allocation5 + $0x28] sm:$0xff]  ;;  %s745_s11 = sshll.u32 %s1198_s10, 4  ;;  %s746_s11 = int_to_ptr.vmem [resolvable:$true] %s745_s11 }
  0x10   :  { %v1038_v2 = vld [vmem:[#allocation5 + $0xb8] sm:$0xff]  ;;  %560 = vmatpush.bf16.msra.mxu1 %v1030_v1  ;;  %v1037_v5 = vld [vmem:[#allocation5 + $0xb0] sm:$0xff]  ;;  %v1028_v8 = vld [vmem:[#allocation5 + $0x68] sm:$0xff] }
  0x11   :  { %573 = vmatpush.bf16.msra.mxu2 %v1038_v2  ;;  %v1046_v6 = vld [vmem:[#allocation5 + $0xf8] sm:$0xff]  ;;  %v1036_v9 = vld [vmem:[#allocation5 + $0xa8] sm:$0xff]  ;;  %v1045_v10 = vld [vmem:[#allocation5 + $0xf0] sm:$0xff] }
  0x12   :  { %586 = vmatpush.bf16.msra.mxu3 %v1046_v6  ;;  %v1019_v11 = vld [vmem:[#allocation5 + $0x20] sm:$0xff]  ;;  %v1044_v14 = vld [vmem:[#allocation5 + $0xe8] sm:$0xff]  ;;  %v1018_v15 = vld [vmem:[#allocation5 + $0x18] sm:$0xff] }
  0x13   :  { %548 = vmatpush.bf16.msra.mxu0 %v1021_v3  ;;  %v1027_v12 = vld [vmem:[#allocation5 + $0x60] sm:$0xff]  ;;  %v1026_v16 = vld [vmem:[#allocation5 + $0x58] sm:$0xff]  ;;  %v1017_v19 = vld [vmem:[#allocation5 + $0x10] sm:$0xff] }
  0x14   :  { %561 = vmatpush.bf16.msra.mxu1 %v1029_v4  ;;  %v1035_v13 = vld [vmem:[#allocation5 + $0xa0] sm:$0xff]  ;;  %v1034_v17 = vld [vmem:[#allocation5 + $0x98] sm:$0xff]  ;;  %v1025_v20 = vld [vmem:[#allocation5 + $0x50] sm:$0xff] }
  0x15   :  { %574 = vmatpush.bf16.msra.mxu2 %v1037_v5  ;;  %v1043_v18 = vld [vmem:[#allocation5 + $0xe0] sm:$0xff]  ;;  %v1033_v21 = vld [vmem:[#allocation5 + $0x90] sm:$0xff]  ;;  %v1042_v22 = vld [vmem:[#allocation5 + $0xd8] sm:$0xff] }
  0x16   :  { %587 = vmatpush.bf16.msra.mxu3 %v1045_v10  ;;  %v1016_v23 = vld [vmem:[#allocation5 + $0x8] sm:$0xff]  ;;  %v1041_v27 = vld [vmem:[#allocation5 + $0xd0] sm:$0xff]  ;;  %v1015_v30 = vld [vmem:[#allocation5] sm:$0xff] }
  0x17   :  { %549 = vmatpush.bf16.msra.mxu0 %v1020_v7  ;;  %v1024_v24 = vld [vmem:[#allocation5 + $0x48] sm:$0xff]  ;;  %v1023_v31 = vld [vmem:[#allocation5 + $0x40] sm:$0xff]  ;;  %v1054_v35 = vld [vmem:[#allocation5 + $0x138] sm:$0xff] }
  0x18   :  { %562 = vmatpush.bf16.msra.mxu1 %v1028_v8  ;;  %v66_v25 = vld [vmem:[#allocation2] sm:$0xff]  ;;  %v67_v28 = vld [vmem:[#allocation2 + $0x8] sm:$0xff]  ;;  %v1062_v36 = vld [vmem:[#allocation5 + $0x178] sm:$0xff] }
  0x19   :  { %575 = vmatpush.bf16.msra.mxu2 %v1036_v9  ;;  %v1032_v26 = vld [vmem:[#allocation5 + $0x88] sm:$0xff]  ;;  %v190_v29 = vunpack.c.l.b16 %v66_v25  ;;  %v192_v32 = vunpack.c.l.b16 %v67_v28  ;;  %v191_v33 = vunpack.c.h.b16 %v66_v25  ;;  %v1031_v34 = vld [vmem:[#allocation5 + $0x80] sm:$0xff]  ;;  %v1070_v37 = vld [vmem:[#allocation5 + $0x1b8] sm:$0xff]  ;;  %v193_v46 = vunpack.c.h.b16 %v67_v28 }
  0x1a   :  { %588 = vmatpush.bf16.msra.mxu3 %v1044_v14  ;;  %v1040_v39 = vld [vmem:[#allocation5 + $0xc8] sm:$0xff]  ;;  %v1053_v42 = vld [vmem:[#allocation5 + $0x130] sm:$0xff]  ;;  %v1039_v45 = vld [vmem:[#allocation5 + $0xc0] sm:$0xff] }
  0x1b   :  { %550 = vmatpush.bf16.msra.mxu0 %v1019_v11  ;;  %v197_v38 = vpack.c.b16 %v190_v29, %v190_v29  ;;  %v199_v40 = vpack.c.b16 %v192_v32, %v192_v32  ;;  %v198_v41 = vpack.c.b16 %v191_v33, %v191_v33  ;;  %v1061_v43 = vld [vmem:[#allocation5 + $0x170] sm:$0xff]  ;;  %v1052_v47 = vld [vmem:[#allocation5 + $0x128] sm:$0xff]  ;;  %v200_v50 = vpack.c.b16 %v193_v46, %v193_v46  ;;  %v1051_v51 = vld [vmem:[#allocation5 + $0x120] sm:$0xff] }
  0x1c   :  { %563 = vmatpush.bf16.msra.mxu1 %v1027_v12  ;;  %v1069_v44 = vld [vmem:[#allocation5 + $0x1b0] sm:$0xff]  ;;  %v1060_v48 = vld [vmem:[#allocation5 + $0x168] sm:$0xff]  ;;  %v1059_v52 = vld [vmem:[#allocation5 + $0x160] sm:$0xff] }
  0x1d   :  { %576 = vmatpush.bf16.msra.mxu2 %v1035_v13  ;;  %v1068_v49 = vld [vmem:[#allocation5 + $0x1a8] sm:$0xff]  ;;  %v1067_v53 = vld [vmem:[#allocation5 + $0x1a0] sm:$0xff]  ;;  %v1050_v54 = vld [vmem:[#allocation5 + $0x118] sm:$0xff] }
  0x1e   :  { %589 = vmatpush.bf16.msra.mxu3 %v1043_v18  ;;  %v1058_v55 = vld [vmem:[#allocation5 + $0x158] sm:$0xff]  ;;  %v1049_v57 = vld [vmem:[#allocation5 + $0x110] sm:$0xff]  ;;  %v1048_v60 = vld [vmem:[#allocation5 + $0x108] sm:$0xff] }
  0x1f   :  { %551 = vmatpush.bf16.msra.mxu0 %v1018_v15  ;;  %v1066_v56 = vld [vmem:[#allocation5 + $0x198] sm:$0xff]  ;;  %v1057_v58 = vld [vmem:[#allocation5 + $0x150] sm:$0xff]  ;;  %v1056_v62 = vld [vmem:[#allocation5 + $0x148] sm:$0xff] }
  0x20   :  { %564 = vmatpush.bf16.msra.mxu1 %v1026_v16  ;;  %v1065_v59 = vld [vmem:[#allocation5 + $0x190] sm:$0xff]  ;;  %v1064_v63 = vld [vmem:[#allocation5 + $0x188] sm:$0xff]  ;;  %v69_v0 = vld [vmem:[#allocation2 + $0x18] sm:$0xf] }
  0x21   :  { %577 = vmatpush.bf16.msra.mxu2 %v1034_v17  ;;  %v68_v61 = vld [vmem:[#allocation2 + $0x10] sm:$0xff]  ;;  %v1047_v2 = vld [vmem:[#allocation5 + $0x100] sm:$0xff]  ;;  %v196_v4 = vunpack.c.l.b16 %v69_v0  ;;  %v1076_v17 = vld [vmem:[#allocation7 + $0x28] sm:$0xff] }
  0x22   :  { %590 = vmatpush.bf16.msra.mxu3 %v1042_v22  ;;  %v194_v1 = vunpack.c.l.b16 %v68_v61  ;;  %v195_v3 = vunpack.c.h.b16 %v68_v61  ;;  %v1055_v5 = vld [vmem:[#allocation5 + $0x140] sm:$0xff]  ;;  %v1078_v12 = vld [vmem:[#allocation7 + $0x38] sm:$0xff]  ;;  %v1077_v15 = vld [vmem:[#allocation7 + $0x30] sm:$0xff] }
  0x23   :  { %552 = vmatpush.bf16.msra.mxu0 %v1017_v19  ;;  %v1063_v6 = vld [vmem:[#allocation5 + $0x180] sm:$0xff]  ;;  %v203_v9 = vpack.c.b16 %v196_v4, %v196_v4  ;;  %v1072_v28 = vld [vmem:[#allocation7 + $0x8] sm:$0xff] }
  0x24   :  { %565 = vmatpush.bf16.msra.mxu1 %v1025_v20  ;;  %v201_v7 = vpack.c.b16 %v194_v1, %v194_v1  ;;  %v202_v8 = vpack.c.b16 %v195_v3, %v195_v3  ;;  %v1085_v18 = vld [vmem:[%s1249_s2] ss:$0 sm:$0xff] }
  0x25   :  { %578 = vmatpush.bf16.msra.mxu2 %v1033_v21  ;;  %v1075_v21 = vld [vmem:[#allocation7 + $0x20] sm:$0xff] }
  0x26   :  { %591 = vmatpush.bf16.msra.mxu3 %v1041_v27  ;;  %v1071_v32 = vld [vmem:[#allocation7] sm:$0xff] }
  0x27   :  { %553 = vmatpush.bf16.msra.mxu0 %v1016_v23  ;;  %v1074_v23 = vld [vmem:[#allocation7 + $0x18] sm:$0xff] }
  0x28   :  { %566 = vmatpush.bf16.msra.mxu1 %v1024_v24 }
  0x29   :  { %579 = vmatpush.bf16.msra.mxu2 %v1032_v26  ;;  %v1073_v26 = vld [vmem:[#allocation7 + $0x10] sm:$0xff] }
  0x2a   :  { %592 = vmatpush.bf16.msra.mxu3 %v1040_v39 }
  0x2b   :  { %554 = vmatpush.bf16.msra.mxu0 %v1015_v30 }
  0x2c   :  { %567 = vmatpush.bf16.msra.mxu1 %v1023_v31 }
  0x2d   :  { %580 = vmatpush.bf16.msra.mxu2 %v1031_v34 }
  0x2e   :  { %555 = vmatmul.bf16.vlgmr.msra.gmra.mxu0 %v197_v38  ;;  %593 = vmatpush.bf16.msra.mxu3 %v1039_v45 }
  0x2f   :  { %599 = vmatpush.bf16.msrb.mxu0 %v1054_v35  ;;  %568 = vmatmul.bf16.vlgmr.msra.gmra.mxu1 %v198_v41 }
  0x30   :  { %612 = vmatpush.bf16.msrb.mxu1 %v1062_v36  ;;  %581 = vmatmul.bf16.vlgmr.msra.gmra.mxu2 %v199_v40 }
  0x31   :  { %625 = vmatpush.bf16.msrb.mxu2 %v1070_v37  ;;  %594 = vmatmul.bf16.vlgmr.msra.gmra.mxu3 %v200_v50 }
  0x32   :  { %726 = vmatpush.bf16.msrb.mxu3 %v1078_v12 }
  0x33   :  { %600 = vmatpush.bf16.msrb.mxu0 %v1053_v42 }
  0x34   :  { %613 = vmatpush.bf16.msrb.mxu1 %v1061_v43 }
  0x35   :  { %626 = vmatpush.bf16.msrb.mxu2 %v1069_v44 }
  0x36   :  { %727 = vmatpush.bf16.msrb.mxu3 %v1077_v15 }
  0x37   :  { %601 = vmatpush.bf16.msrb.mxu0 %v1052_v47 }
  0x38   :  { %614 = vmatpush.bf16.msrb.mxu1 %v1060_v48 }
  0x39   :  { %627 = vmatpush.bf16.msrb.mxu2 %v1068_v49 }
  0x3a   :  { %728 = vmatpush.bf16.msrb.mxu3 %v1076_v17 }
  0x3b   :  { %602 = vmatpush.bf16.msrb.mxu0 %v1051_v51 }
  0x3c   :  { %615 = vmatpush.bf16.msrb.mxu1 %v1059_v52 }
  0x3d   :  { %628 = vmatpush.bf16.msrb.mxu2 %v1067_v53 }
  0x3e   :  { %729 = vmatpush.bf16.msrb.mxu3 %v1075_v21 }
  0x3f   :  { %603 = vmatpush.bf16.msrb.mxu0 %v1050_v54  ;;  %v1086_v54 = vld [vmem:[%s1251_s4] ss:$0 sm:$0xff] }
  0x40   :  { %616 = vmatpush.bf16.msrb.mxu1 %v1058_v55 }
  0x41   :  { %629 = vmatpush.bf16.msrb.mxu2 %v1066_v56 }
  0x42   :  { %730 = vmatpush.bf16.msrb.mxu3 %v1074_v23 }
  0x43   :  { %604 = vmatpush.bf16.msrb.mxu0 %v1049_v57 }
  0x44   :  { %617 = vmatpush.bf16.msrb.mxu1 %v1057_v58 }
  0x45   :  { %630 = vmatpush.bf16.msrb.mxu2 %v1065_v59 }
  0x46   :  { %731 = vmatpush.bf16.msrb.mxu3 %v1073_v26 }
  0x47   :  { %605 = vmatpush.bf16.msrb.mxu0 %v1048_v60 }
  0x48   :  { %618 = vmatpush.bf16.msrb.mxu1 %v1056_v62 }
  0x49   :  { %631 = vmatpush.bf16.msrb.mxu2 %v1064_v63 }
  0x4a   :  { %732 = vmatpush.bf16.msrb.mxu3 %v1072_v28 }
  0x4b   :  { %606 = vmatpush.bf16.msrb.mxu0 %v1047_v2 }
  0x4c   :  { %619 = vmatpush.bf16.msrb.mxu1 %v1055_v5 }
  0x4d   :  { %632 = vmatpush.bf16.msrb.mxu2 %v1063_v6 }
  0x4e   :  { %607 = vmatmul.bf16.vlgmr.msrb.gmra.mxu0 %v201_v7  ;;  %733 = vmatpush.bf16.msrb.mxu3 %v1071_v32 }
  0x4f   :  { %620 = vmatmul.bf16.vlgmr.msrb.gmra.mxu1 %v202_v8 }
  0x50   :  { %633 = vmatmul.bf16.vlgmr.msrb.gmra.mxu2 %v203_v9 }
  0xab   :  { %v556_v10 = vpop.f32.mrf.mxu0 }
  0xac   :  { %v569_v11 = vpop.f32.mrf.mxu1  ;;  %v557_v22 = vadd.f32 %v1085_v18, %v556_v10 }
  0xae   :  { %v570_v24 = vadd.f32 %v569_v11, %v557_v22 }
  0xb3   :  { %v582_v13 = vpop.f32.mrf.mxu2  ;;  %v558_v14 = vpop.f32.mrf.mxu0 }
  0xb4   :  { %v571_v16 = vpop.f32.mrf.mxu1  ;;  %v595_v19 = vpop.f32.mrf.mxu3  ;;  %v583_v27 = vadd.f32 %v582_v13, %v570_v24 }
  0xb6   :  { %v596_v29 = vadd.f32 %v595_v19, %v583_v27 }
  0xbb   :  { %v584_v20 = vpop.f32.mrf.mxu2 }
  0xbc   :  { %v597_v25 = vpop.f32.mrf.mxu3 }
  0xcb   :  { %v608_v30 = vpop.f32.mrf.mxu0 }
  0xcc   :  { %v621_v31 = vpop.f32.mrf.mxu1  ;;  %v609_v33 = vadd.f32 %v608_v30, %v596_v29 }
  0xce   :  { %v622_v34 = vadd.f32 %v621_v31, %v609_v33 }
  0xd3   :  { %v634_v35 = vpop.f32.mrf.mxu2  ;;  %v610_v37 = vpop.f32.mrf.mxu0 }
  0xd4   :  { %v635_v36 = vadd.f32 %v634_v35, %v622_v34  ;;  %v623_v38 = vpop.f32.mrf.mxu1 }
  0xd6   :  { %v982_v39 = vmul.f32 -1.442695, %v635_v36 }
  0xd8   :  { %1087 = vpow2.f32 %v982_v39 }
  0xdb   :  { %v636_v40 = vpop.f32.mrf.mxu2 }
  0xde   :  { %v1088_v41 = vpop.eup %1087 }
  0xdf   :  { %v641_v42 = vadd.f32 1.0, %v1088_v41 }
  0xe1   :  { %1089 = vrcp.f32 %v641_v42  ;;  %v653_v46 = vand.u32 2147483648, %v641_v42  ;;  %v651_v48 = vand.u32 2147483647, %v641_v42  ;;  %vm647_vm1 = vweird.f32 %v641_v42 }
  0xe3   :  { %v654_v50 = vor.u32 1.1754944e-38, %v653_v46  ;;  %vm652_vm3 = vcmp.eq.f32.partialorder %v651_v48, 8.507059e+37 }
  0xe7   :  { %v1090_v43 = vpop.eup %1089 }
  0xe8   :  { %v643_v44 = vmul.f32 %v1090_v43, %v641_v42  ;;  %vm648_vm0 = vweird.f32 %v1090_v43 }
  0xe9   :  { %vm649_vm2 = vmor %vm647_vm1, %vm648_vm0 }
  0xea   :  { %v644_v45 = vsub.f32 1.0, %v643_v44 }
  0xec   :  { %v645_v47 = vmul.f32 %v1090_v43, %v644_v45 }
  0xee   :  { %v646_v49 = vadd.f32 %v1090_v43, %v645_v47 }
  0xf0   :  { %v650_v51 = vsel %vm649_vm2, %v1090_v43, %v646_v49 }
  0xf1   :  { %v655_v52 = vsel %vm652_vm3, %v654_v50, %v650_v51 }
  0xf2   :  { %v657_v53 = vpack.c.bf16 %v655_v52, %v655_v52 }
  0xf4   :  { %734 = vmatmul.bf16.vlgmr.msrb.gmra.mxu3 %v657_v53 }
 0x177   :  { %v735_v55 = vpop.f32.mrf.mxu3 }
 0x178   :  { %v736_v56 = vadd.f32 %v1086_v54, %v735_v55 }
 0x17a   :  { %739 = vst [vmem:[#allocation8] sm:$0xff] %v736_v56 }
 0x17b   :  { %750 = dma.vmem_to_hbm [thread:$0]  %s746_s11, 128, %s748_s14, [#allocation4]  }
 0x17f   :  { %v737_v57 = vpop.f32.mrf.mxu3 }
 0x180   :  { %1191 = dma.done.wait [#allocation4], 128  }
 0x181   :  { %1192 = vsyncadd [#allocation4], 4294967168 }
 0x182   :  { %755 = vsyncpa [#allocation3], 1 }
 0x183   :  { %756 = vsyncpa [#allocation6], 1 }
 0x184   :  { %757 = vsyncpa [#allocation4], 1 }

</bundles_post_ra>
